<compile_context>
chip_gen: v6e
topology: v6e:2x2x1
jax: 0.10.0
libtpu: 0.0.40
codegen_flags: <defaults>
</compile_context>

<pallas_src>
import functools
import math

import jax
import jax.numpy as jnp
from jax.experimental import pallas as pl
from jax.experimental.pallas import tpu as pltpu


def _round_up(x, m):
    return ((x + m - 1) // m) * m


def _cdiv(a, b):
    return -(-a // b)


def _vmem_capacity_bytes():
    """Physical VMEM per TensorCore; falls back to 128 MiB (v5e/v6e)."""
    try:
        info = pltpu.get_tpu_info()
        cap = getattr(info, "vmem_capacity_bytes", None)
        if cap:
            return int(cap)
    except Exception:
        pass
    return 128 << 20


# --------------------------------------------------------------------------- #
# Kernel 1: full layer stack resident in VMEM (small L * F_pad^2).
# Activation between layers never touches an explicit scratch; the last layer
# writes straight to the output tile.
# --------------------------------------------------------------------------- #
def _resident_stack_kernel(x_ref, w_ref, b_ref, o_ref, *,
                           n_layers, apply_leaky_relu, negative_slope,
                           compute_dtype):
    h = x_ref[...].astype(compute_dtype)
    for l in range(n_layers):                      # static unroll: one launch
        acc = jnp.dot(h, w_ref[l], preferred_element_type=jnp.float32)
        acc = acc + b_ref[l]                       # [1, F_pad] broadcast, f32 VPU
        if l == n_layers - 1:
            o_ref[...] = acc.astype(o_ref.dtype)   # straight to output tile
        else:
            # PyTorch spec: activation only when layer_type > 1 and i < n_layers-1
            # (`LeakReLU` in the spec is a typo; LeakyReLU(0.2) implemented).
            if apply_leaky_relu:
                acc = jnp.where(acc >= 0, acc, negative_slope * acc)
            h = acc.astype(compute_dtype)          # re-quantize for next MXU pass


# --------------------------------------------------------------------------- #
# Kernel 2: layer streaming.  grid = (M tiles, L); one weight block in compute,
# one in flight.  Activation lives in a compute_dtype VMEM scratch that persists
# across the (arbitrary) layer axis.
# --------------------------------------------------------------------------- #
def _layer_stream_kernel(x_ref, w_ref, b_ref, o_ref, act_ref, *,
                         apply_leaky_relu, negative_slope):
    l = pl.program_id(1)
    last = pl.num_programs(1) - 1

    @pl.when(l == 0)
    def _():
        act_ref[...] = x_ref[...].astype(act_ref.dtype)

    acc = jnp.dot(act_ref[...], w_ref[0], preferred_element_type=jnp.float32)
    acc = acc + b_ref[0]                           # [1, F_pad] broadcast, f32

    @pl.when(l == last)
    def _():
        o_ref[...] = acc.astype(o_ref.dtype)       # final layer -> output tile

    @pl.when(l != last)
    def _():
        h = acc
        if apply_leaky_relu:
            h = jnp.where(h >= 0, h, negative_slope * h)
        act_ref[...] = h.astype(act_ref.dtype)


def fused_projection(x, w_stack, b_stack, *, apply_leaky_relu,
                     negative_slope=0.2, compute_dtype=jnp.bfloat16,
                     force_stream=None):
    """x: [B, F_in]; w_stack: [L, F_pad, F_pad] (compute_dtype, zero-padded,
    pre-transposed to [in, out]); b_stack: [L, 1, F_pad] (f32, zero-padded).
    Returns [B_pad, F_pad] in x.dtype."""
    B, F_in = x.shape
    L, F_pad, _ = w_stack.shape

    vmem_cap = _vmem_capacity_bytes()
    usable = int(vmem_cap * 0.8)           # ~51 MiB on v7x, ~102 MiB on v5e/v6e
    small_vmem = vmem_cap <= (64 << 20)    # v7x-like: 64 MiB per TC, 2 TCs/chip

    x_bytes = jnp.dtype(x.dtype).itemsize
    w_bytes = jnp.dtype(w_stack.dtype).itemsize
    act_bytes = jnp.dtype(compute_dtype).itemsize

    # ---- M tiling: minimize batch padding; >=2 parallel steps on 2-TC chips.
    B8 = _round_up(max(B, 8), 8)
    tm_cap = 256 if small_vmem else 512
    n_tiles = _cdiv(B8, tm_cap)
    if small_vmem:
        n_tiles = max(n_tiles, min(2, B8 // 8))
    tm = _round_up(_cdiv(B8, n_tiles), 8)

    # ---- VMEM footprints for the two paths.
    def resident_need(t):
        return (2 * t * F_pad * x_bytes            # x tiles (double-buffered)
                + 2 * t * F_pad * x_bytes          # out tiles
                + L * F_pad * F_pad * w_bytes      # weights (single-buffered)
                + L * F_pad * 4)                   # biases  (single-buffered)

    def stream_need(t):
        return (2 * t * F_pad * x_bytes
                + 2 * t * F_pad * x_bytes
                + 2 * F_pad * F_pad * w_bytes      # one layer in flight + one live
                + 2 * F_pad * 4
                + t * F_pad * act_bytes)           # activation scratch

    if force_stream is None:
        stream = resident_need(tm) > usable // 2
    else:
        stream = bool(force_stream)

    need_fn = stream_need if stream else resident_need
    while tm > 8 and need_fn(tm) > usable:         # VMEM pressure: shrink M tile
        tm = _round_up(_cdiv(tm, 2), 8)
    B_pad = _round_up(B8, tm)
    n_tiles = B_pad // tm

    # ---- pad input only when required (skip the extra HBM copy otherwise).
    pad_r, pad_c = B_pad - B, F_pad - F_in
    x_in = x if (pad_r == 0 and pad_c == 0) else jnp.pad(x, ((0, pad_r), (0, pad_c)))

    vmem_limit = int(min(usable, max(need_fn(tm) + (4 << 20), 32 << 20)))
    cost = pl.CostEstimate(
        flops=int(2 * B_pad * F_pad * F_pad * L),
        transcendentals=0,
        bytes_accessed=int(2 * B_pad * F_pad * x_bytes
                           + L * F_pad * F_pad * w_bytes
                           + L * F_pad * 4),
    )
    out_shape = jax.ShapeDtypeStruct((B_pad, F_pad), x.dtype)

    if stream:
        kernel = functools.partial(
            _layer_stream_kernel,
            apply_leaky_relu=apply_leaky_relu,
            negative_slope=negative_slope,
        )
        grid_spec = pltpu.PrefetchScalarGridSpec(
            num_scalar_prefetch=0,
            grid=(n_tiles, L),
            in_specs=[
                pl.BlockSpec((tm, F_pad), lambda i, l: (i, 0)),
                pl.BlockSpec((1, F_pad, F_pad), lambda i, l: (l, 0, 0)),
                pl.BlockSpec((1, 1, F_pad), lambda i, l: (l, 0, 0)),
            ],
            out_specs=pl.BlockSpec((tm, F_pad), lambda i, l: (i, 0)),
            scratch_shapes=[pltpu.VMEM((tm, F_pad), compute_dtype)],
        )
        return pl.pallas_call(
            kernel,
            out_shape=out_shape,
            grid_spec=grid_spec,
            compiler_params=pltpu.CompilerParams(
                dimension_semantics=("parallel", "arbitrary"),
                vmem_limit_bytes=vmem_limit),
            cost_estimate=cost,
        )(x_in, w_stack, b_stack)

    # ---------------- resident path ----------------
    kernel = functools.partial(
        _resident_stack_kernel,
        n_layers=L,
        apply_leaky_relu=apply_leaky_relu,
        negative_slope=negative_slope,
        compute_dtype=compute_dtype,
    )

    def resident_call(single_buffer_params):
        # Grid-invariant weight/bias blocks -> no prefetch of a different block is
        # ever needed, so a single buffer halves their VMEM footprint.
        extra = {"pipeline_mode": pl.Buffered(1)} if single_buffer_params else {}
        grid_spec = pltpu.PrefetchScalarGridSpec(
            num_scalar_prefetch=0,
            grid=(n_tiles,),
            in_specs=[
                pl.BlockSpec((tm, F_pad), lambda i: (i, 0)),
                pl.BlockSpec((L, F_pad, F_pad), lambda i: (0, 0, 0), **extra),
                pl.BlockSpec((L, 1, F_pad), lambda i: (0, 0, 0), **extra),
            ],
            out_specs=pl.BlockSpec((tm, F_pad), lambda i: (i, 0)),
        )
        return pl.pallas_call(
            kernel,
            out_shape=out_shape,
            grid_spec=grid_spec,
            compiler_params=pltpu.CompilerParams(
                dimension_semantics=("parallel",),
                vmem_limit_bytes=vmem_limit),
            cost_estimate=cost,
        )(x_in, w_stack, b_stack)

    try:
        return resident_call(True)
    except Exception:
        # Fallback if pl.Buffered(1) is rejected by this jax version: default
        # double-buffering (same numerics, slightly more VMEM).
        return resident_call(False)


class ProjectionPallas:
    """JAX/Pallas port of Projection(in_planes, out_planes, n_layers, layer_type)."""

    def __init__(self, in_planes, out_planes=None, n_layers=1, layer_type=0, *,
                 key, compute_dtype=jnp.bfloat16):
        if out_planes is None:
            out_planes = in_planes
        self.in_planes = in_planes
        self.out_planes = out_planes
        self.n_layers = n_layers
        self.layer_type = layer_type
        self.compute_dtype = compute_dtype
        # Lane-dense feature padding to the next multiple of 128 (never more).
        self.f_pad = _round_up(max(in_planes, out_planes, 128), 128)

        # Per-layer unpadded f32 parameters (kept for the pure-JAX reference).
        self.params = []
        _out = None
        for i in range(n_layers):
            _in = in_planes if i == 0 else _out
            _out = out_planes
            key, wk, bk = jax.random.split(key, 3)
            # torch.nn.init.xavier_normal_: std = sqrt(2 / (fan_in + fan_out))
            std = math.sqrt(2.0 / (_in + _out))
            w = std * jax.random.normal(wk, (_in, _out), jnp.float32)  # [in, out]
            # nn.Linear default bias init: U(-1/sqrt(fan_in), 1/sqrt(fan_in))
            bound = 1.0 / math.sqrt(_in)
            b = jax.random.uniform(bk, (_out,), jnp.float32, -bound, bound)
            self.params.append((w, b))

        # Zero-padded, stacked kernel parameters. Padding is exact: padded input
        # columns are zero and padded weight rows/cols & biases are zero, so padded
        # output columns stay exactly zero through every layer (LeakyReLU(0) == 0).
        F = self.f_pad
        w_stack = jnp.zeros((n_layers, F, F), jnp.float32)
        b_stack = jnp.zeros((n_layers, 1, F), jnp.float32)
        for i, (w, b) in enumerate(self.params):
            w_stack = w_stack.at[i, :w.shape[0], :w.shape[1]].set(w)
            b_stack = b_stack.at[i, 0, :b.shape[0]].set(b)
        self.w_stack = w_stack.astype(compute_dtype)   # bf16 storage halves weight DMA
        self.b_stack = b_stack                          # bias stays f32 (VPU add)

    def __call__(self, x, *, force_stream=None):
        B = x.shape[0]
        out = fused_projection(
            x, self.w_stack, self.b_stack,
            apply_leaky_relu=(self.layer_type > 1),
            negative_slope=0.2,
            compute_dtype=self.compute_dtype,
            force_stream=force_stream,
        )
        return out[:B, :self.out_planes]

    def reference(self, x):
        """Pure-JAX f32 reference matching the original PyTorch forward."""
        for i, (w, b) in enumerate(self.params):
            x = x @ w + b
            if self.layer_type > 1 and i < self.n_layers - 1:
                x = jnp.where(x >= 0, x, 0.2 * x)
        return x


if __name__ == "__main__":
    key = jax.random.PRNGKey(0)
    key, xk, pk1, pk2, pk3 = jax.random.split(key, 5)

    # Case 1: exact f32-compute path, resident-stack kernel, tiny shapes.
    batch, in_planes, out_planes = 8, 32, 32
    x = jax.random.normal(xk, (batch, in_planes), jnp.float32)
    proj_f32 = ProjectionPallas(in_planes, out_planes, n_layers=2, layer_type=0,
                                key=pk1, compute_dtype=jnp.float32)
    out = jax.block_until_ready(proj_f32(x))
    ref = proj_f32.reference(x)
    assert out.shape == (batch, out_planes)
    assert jnp.allclose(out, ref, atol=1e-4, rtol=1e-4), "f32 resident path mismatch"

    # Case 2: bf16 MXU path + LeakyReLU gating + layer-streaming grid axis (L=3).
    key, xk2 = jax.random.split(key)
    batch2, in2, out2 = 300, 48, 24
    x2 = jax.random.normal(xk2, (batch2, in2), jnp.float32)
    proj_stream = ProjectionPallas(in2, out2, n_layers=3, layer_type=2, key=pk2)
    out2_arr = jax.block_until_ready(proj_stream(x2, force_stream=True))
    ref2 = proj_stream.reference(x2)
    assert out2_arr.shape == (batch2, out2)
    assert jnp.allclose(out2_arr, ref2, atol=7.5e-2, rtol=7.5e-2), "stream path mismatch"

    # Case 3: multi-tile M grid (parallel axis), resident path, bf16 + LeakyReLU.
    key, xk3 = jax.random.split(key)
    batch3, in3, out3 = 520, 64, 64
    x3 = jax.random.normal(xk3, (batch3, in3), jnp.float32)
    proj_multi = ProjectionPallas(in3, out3, n_layers=2, layer_type=2, key=pk3)
    out3_arr = jax.block_until_ready(proj_multi(x3))
    ref3 = proj_multi.reference(x3)
    assert out3_arr.shape == (batch3, out3)
    assert jnp.allclose(out3_arr, ref3, atol=7.5e-2, rtol=7.5e-2), "multi-tile mismatch"

    print("KERNEL_OK")
</pallas_src>

<mosaic_0001>
module attributes {stable_mosaic.version = 11 : i64} {
  func.func @_resident_stack_kernel(%arg0: i32, %arg1: memref<8x128xf32, #tpu.memory_space<vmem>>, %arg2: memref<2x128x128xf32, #tpu.memory_space<vmem>>, %arg3: memref<2x1x128xf32, #tpu.memory_space<vmem>>, %arg4: memref<8x128xf32, #tpu.memory_space<vmem>>) attributes {dimension_semantics = [#tpu.dimension_semantics<parallel>], iteration_bounds = array<i64: 1>, scalar_prefetch = 0 : i64, scratch_operands = 0 : i64, tpu.core_type = #tpu.core_type<tc>, window_params = [{transform_indices = @transform_0, window_bounds = array<i64: 8, 128>}, {pipeline_mode = #tpu.pipeline_mode<synchronous>, transform_indices = @transform_1, window_bounds = array<i64: 2, 128, 128>}, {pipeline_mode = #tpu.pipeline_mode<synchronous>, transform_indices = @transform_2, window_bounds = array<i64: 2, 1, 128>}, {transform_indices = @transform_3, window_bounds = array<i64: 8, 128>}]} {
    %c0 = arith.constant 0 : index
    %c0_0 = arith.constant 0 : index
    %0 = vector.load %arg1[%c0, %c0_0] : memref<8x128xf32, #tpu.memory_space<vmem>>, vector<8x128xf32>
    %c0_1 = arith.constant 0 : index
    %c0_2 = arith.constant 0 : index
    %c0_3 = arith.constant 0 : index
    %1 = vector.load %arg2[%c0_1, %c0_2, %c0_3] : memref<2x128x128xf32, #tpu.memory_space<vmem>>, vector<1x128x128xf32>
    %2 = vector.shape_cast %1 : vector<1x128x128xf32> to vector<128x128xf32>
    %cst = arith.constant dense<0.000000e+00> : vector<8x128xf32>
    %3 = tpu.matmul %0, %2, %cst {dimension_numbers = #tpu.dot_dimension_numbers<[1], [0], [0], [1], [0, 0, 1, 1], [], []>} : vector<8x128xf32>, vector<128x128xf32>, vector<8x128xf32> -> vector<8x128xf32>
    %c0_4 = arith.constant 0 : index
    %c0_5 = arith.constant 0 : index
    %c0_6 = arith.constant 0 : index
    %4 = vector.load %arg3[%c0_4, %c0_5, %c0_6] : memref<2x1x128xf32, #tpu.memory_space<vmem>>, vector<1x1x128xf32>
    %5 = vector.shape_cast %4 : vector<1x1x128xf32> to vector<1x128xf32>
    %6 = vector.broadcast %5 : vector<1x128xf32> to vector<8x128xf32>
    %7 = arith.addf %3, %6 : vector<8x128xf32>
    %c1 = arith.constant 1 : index
    %c0_7 = arith.constant 0 : index
    %c0_8 = arith.constant 0 : index
    %8 = vector.load %arg2[%c1, %c0_7, %c0_8] : memref<2x128x128xf32, #tpu.memory_space<vmem>>, vector<1x128x128xf32>
    %9 = vector.shape_cast %8 : vector<1x128x128xf32> to vector<128x128xf32>
    %cst_9 = arith.constant dense<0.000000e+00> : vector<8x128xf32>
    %10 = tpu.matmul %7, %9, %cst_9 {dimension_numbers = #tpu.dot_dimension_numbers<[1], [0], [0], [1], [0, 0, 1, 1], [], []>} : vector<8x128xf32>, vector<128x128xf32>, vector<8x128xf32> -> vector<8x128xf32>
    %c1_10 = arith.constant 1 : index
    %c0_11 = arith.constant 0 : index
    %c0_12 = arith.constant 0 : index
    %11 = vector.load %arg3[%c1_10, %c0_11, %c0_12] : memref<2x1x128xf32, #tpu.memory_space<vmem>>, vector<1x1x128xf32>
    %12 = vector.shape_cast %11 : vector<1x1x128xf32> to vector<1x128xf32>
    %13 = vector.broadcast %12 : vector<1x128xf32> to vector<8x128xf32>
    %14 = arith.addf %10, %13 : vector<8x128xf32>
    %c0_13 = arith.constant 0 : index
    %c0_14 = arith.constant 0 : index
    %15 = vector.load %arg4[%c0_13, %c0_14] : memref<8x128xf32, #tpu.memory_space<vmem>>, vector<8x128xf32>
    tpu.vector_store %arg4[%c0_13, %c0_14], %14 {strides = array<i32>} : memref<8x128xf32, #tpu.memory_space<vmem>>, vector<8x128xf32>,
    return
  }
  func.func @transform_0(%arg0: i32) -> (i32, i32) {
    %c0_i32 = arith.constant 0 : i32
    %c0_i32_0 = arith.constant 0 : i32
    return %arg0, %c0_i32 : i32, i32
  }
  func.func @transform_1(%arg0: i32) -> (i32, i32, i32) {
    %c0_i32 = arith.constant 0 : i32
    %c0_i32_0 = arith.constant 0 : i32
    %c0_i32_1 = arith.constant 0 : i32
    %c0_i32_2 = arith.constant 0 : i32
    return %c0_i32, %c0_i32_0, %c0_i32_1 : i32, i32, i32
  }
  func.func @transform_2(%arg0: i32) -> (i32, i32, i32) {
    %c0_i32 = arith.constant 0 : i32
    %c0_i32_0 = arith.constant 0 : i32
    %c0_i32_1 = arith.constant 0 : i32
    %c0_i32_2 = arith.constant 0 : i32
    return %c0_i32, %c0_i32_0, %c0_i32_1 : i32, i32, i32
  }
  func.func @transform_3(%arg0: i32) -> (i32, i32) {
    %c0_i32 = arith.constant 0 : i32
    %c0_i32_0 = arith.constant 0 : i32
    return %arg0, %c0_i32 : i32, i32
  }
}

module attributes {stable_mosaic.version = 11 : i64} {
  func.func @_resident_stack_kernel(%arg0: i32, %arg1: memref<8x128xf32, #tpu.memory_space<vmem>>, %arg2: memref<2x128x128xf32, #tpu.memory_space<vmem>>, %arg3: memref<2x1x128xf32, #tpu.memory_space<vmem>>, %arg4: memref<8x128xf32, #tpu.memory_space<vmem>>) attributes {dimension_semantics = [#tpu.dimension_semantics<parallel>], iteration_bounds = array<i64: 1>, scalar_prefetch = 0 : i64, scratch_operands = 0 : i64, tpu.core_type = #tpu.core_type<tc>, window_params = [{transform_indices = @transform_0, window_bounds = array<i64: 8, 128>}, {pipeline_mode = #tpu.pipeline_mode<synchronous>, transform_indices = @transform_1, window_bounds = array<i64: 2, 128, 128>}, {pipeline_mode = #tpu.pipeline_mode<synchronous>, transform_indices = @transform_2, window_bounds = array<i64: 2, 1, 128>}, {transform_indices = @transform_3, window_bounds = array<i64: 8, 128>}]} {
    %c0 = arith.constant 0 : index
    %c0_0 = arith.constant 0 : index
    %0 = vector.load %arg1[%c0, %c0_0] : memref<8x128xf32, #tpu.memory_space<vmem>>, vector<8x128xf32>
    %c0_1 = arith.constant 0 : index
    %c0_2 = arith.constant 0 : index
    %c0_3 = arith.constant 0 : index
    %1 = vector.load %arg2[%c0_1, %c0_2, %c0_3] : memref<2x128x128xf32, #tpu.memory_space<vmem>>, vector<1x128x128xf32>
    %2 = vector.shape_cast %1 : vector<1x128x128xf32> to vector<128x128xf32>
    %cst = arith.constant dense<0.000000e+00> : vector<8x128xf32>
    %3 = tpu.matmul %0, %2, %cst {dimension_numbers = #tpu.dot_dimension_numbers<[1], [0], [0], [1], [0, 0, 1, 1], [], []>} : vector<8x128xf32>, vector<128x128xf32>, vector<8x128xf32> -> vector<8x128xf32>
    %c0_4 = arith.constant 0 : index
    %c0_5 = arith.constant 0 : index
    %c0_6 = arith.constant 0 : index
    %4 = vector.load %arg3[%c0_4, %c0_5, %c0_6] : memref<2x1x128xf32, #tpu.memory_space<vmem>>, vector<1x1x128xf32>
    %5 = vector.shape_cast %4 : vector<1x1x128xf32> to vector<1x128xf32>
    %6 = vector.broadcast %5 : vector<1x128xf32> to vector<8x128xf32>
    %7 = arith.addf %3, %6 : vector<8x128xf32>
    %c1 = arith.constant 1 : index
    %c0_7 = arith.constant 0 : index
    %c0_8 = arith.constant 0 : index
    %8 = vector.load %arg2[%c1, %c0_7, %c0_8] : memref<2x128x128xf32, #tpu.memory_space<vmem>>, vector<1x128x128xf32>
    %9 = vector.shape_cast %8 : vector<1x128x128xf32> to vector<128x128xf32>
    %cst_9 = arith.constant dense<0.000000e+00> : vector<8x128xf32>
    %10 = tpu.matmul %7, %9, %cst_9 {dimension_numbers = #tpu.dot_dimension_numbers<[1], [0], [0], [1], [0, 0, 1, 1], [], []>} : vector<8x128xf32>, vector<128x128xf32>, vector<8x128xf32> -> vector<8x128xf32>
    %c1_10 = arith.constant 1 : index
    %c0_11 = arith.constant 0 : index
    %c0_12 = arith.constant 0 : index
    %11 = vector.load %arg3[%c1_10, %c0_11, %c0_12] : memref<2x1x128xf32, #tpu.memory_space<vmem>>, vector<1x1x128xf32>
    %12 = vector.shape_cast %11 : vector<1x1x128xf32> to vector<1x128xf32>
    %13 = vector.broadcast %12 : vector<1x128xf32> to vector<8x128xf32>
    %14 = arith.addf %10, %13 : vector<8x128xf32>
    %c0_13 = arith.constant 0 : index
    %c0_14 = arith.constant 0 : index
    %15 = vector.load %arg4[%c0_13, %c0_14] : memref<8x128xf32, #tpu.memory_space<vmem>>, vector<8x128xf32>
    tpu.vector_store %arg4[%c0_13, %c0_14], %14 {strides = array<i32>} : memref<8x128xf32, #tpu.memory_space<vmem>>, vector<8x128xf32>,
    return
  }
  func.func @transform_0(%arg0: i32) -> (i32, i32) {
    %c0_i32 = arith.constant 0 : i32
    %c0_i32_0 = arith.constant 0 : i32
    return %arg0, %c0_i32 : i32, i32
  }
  func.func @transform_1(%arg0: i32) -> (i32, i32, i32) {
    %c0_i32 = arith.constant 0 : i32
    %c0_i32_0 = arith.constant 0 : i32
    %c0_i32_1 = arith.constant 0 : i32
    %c0_i32_2 = arith.constant 0 : i32
    return %c0_i32, %c0_i32_0, %c0_i32_1 : i32, i32, i32
  }
  func.func @transform_2(%arg0: i32) -> (i32, i32, i32) {
    %c0_i32 = arith.constant 0 : i32
    %c0_i32_0 = arith.constant 0 : i32
    %c0_i32_1 = arith.constant 0 : i32
    %c0_i32_2 = arith.constant 0 : i32
    return %c0_i32, %c0_i32_0, %c0_i32_1 : i32, i32, i32
  }
  func.func @transform_3(%arg0: i32) -> (i32, i32) {
    %c0_i32 = arith.constant 0 : i32
    %c0_i32_0 = arith.constant 0 : i32
    return %arg0, %c0_i32 : i32, i32
  }
}

</mosaic_0001>

<bundles_post_ra>
// kernel: tpu_custom_call.1
= control target key start
LH: loop header
LB: loop body
LE: loop exit
PB: predicated region body
PF: predicated region fallthrough
CT: control target
= control target key end

     0   :  { %8 = vsyncpa [#allocation3], 0  ;;  %s503_s0 = inlined_call_operand.hbm [shape: f32[8,128], index: 0, kind: input, shape index: {}]   ;;  %s504_s1 = inlined_call_operand.hbm [shape: f32[2,128,128], index: 1, kind: input, shape index: {}]   ;;  %s505_s2 = inlined_call_operand.vmem [shape: f32[2,1,128], index: 2, kind: input, shape index: {}]   ;;  %s506_s3 = inlined_call_operand.hbm [shape: f32[8,128], index: 3, kind: output, shape index: {}]  }
   0x1   :  { %9 = vsyncpa [#allocation6], 0 }
   0x2   :  { %10 = vsyncpa [#allocation4], 0  ;;  %s427_s12 = smov [#allocation2]   ;;  %s428_s14 = smov [#allocation5]  }
   0x3   :  { %s17_s13 = sshll.u32 %s427_s12, 4  ;;  %s26_s15 = sshll.u32 %s428_s14, 4  ;;  %s18_s13 = int_to_ptr.vmem [resolvable:$true] %s17_s13  ;;  %s27_s15 = int_to_ptr.vmem [resolvable:$true] %s26_s15 }
   0x4   :  { %s369_s16 = scalar_lea.vmem %s18_s13, 128  ;;  %p374_p1 = scmp.lt.s32.totalorder %s18_s13, %s18_s13 }
   0x5   :  { %p370_p0 = scmp.ne.s32.totalorder %s18_s13, %s369_s16  ;;  %p375_p2 = scmp.lt.s32.totalorder %s369_s16, %s369_s16 }
   0x7   :  { %p376_p3 = por %p375_p2, %p374_p1 }
   0x9   :  { %p377_p4 = pnand %p376_p3, %p370_p0 }
   0xb   :  { %380 = shalt.err (!%p377_p4)
}
   0xc   :  { %20 = dma.hbm_to_vmem [thread:$0]  %s503_s0, 128, %s18_s13, [#allocation3]  }
   0xd   :  { %s389_s19 = scalar_lea.vmem %s27_s15, 4096  ;;  %p394_p6 = scmp.lt.s32.totalorder %s27_s15, %s27_s15 }
   0xe   :  { %p390_p5 = scmp.ne.s32.totalorder %s27_s15, %s389_s19  ;;  %p395_p7 = scmp.lt.s32.totalorder %s389_s19, %s389_s19 }
  0x10   :  { %p396_p8 = por %p395_p7, %p394_p6 }
  0x12   :  { %p397_p9 = pnand %p396_p8, %p390_p5 }
  0x14   :  { %400 = shalt.err (!%p397_p9)
}
  0x15   :  { %s429_s20 = smov 128   ;;  %s430_s21 = smov 8  }
  0x16   :  { %32 = dma.hbm_to_vmem [thread:$0]  %s504_s1, 4096, %s27_s15, [#allocation6], %s429_s20, %s429_s20, %s430_s21  }
  0x17   :  { %421 = dma.done.wait [#allocation3], 128  }
  0x18   :  { %422 = vsyncadd [#allocation3], 4294967168 }
  0x19   :  { %423 = dma.done.wait [#allocation6], 4096  }
  0x1a   :  { %424 = vsyncadd [#allocation6], 4294963200  ;;  %v431_v0 = vmov 0.0   ;;  %vm432_vm0 = vmmov 0   ;;  %v57_v1 = vld [vmem:[#allocation5 + $0x78] sm:$0xff]  ;;  %v56_v2 = vld [vmem:[#allocation5 + $0x70] sm:$0xff] }
  0x1b   :  { %284 = vmatprep.subr.mxu0 %v431_v0  ;;  %316 = vmatprep.mubr.msk.f32.mxu0 %vm432_vm0, %v431_v0  ;;  %v55_v3 = vld [vmem:[#allocation5 + $0x68] sm:$0xff]  ;;  %v54_v4 = vld [vmem:[#allocation5 + $0x60] sm:$0xff]  ;;  %v151_v5 = vld [vmem:[#allocation5 + $0xf8] sm:$0xff]  ;;  %s433_s26 = smov [#allocation7]  }
  0x1c   :  { %319 = vmatprep.subr.mxu1 %v431_v0  ;;  %351 = vmatprep.mubr.msk.f32.mxu1 %vm432_vm0, %v431_v0  ;;  %v53_v6 = vld [vmem:[#allocation5 + $0x58] sm:$0xff]  ;;  %v150_v7 = vld [vmem:[#allocation5 + $0xf0] sm:$0xff]  ;;  %v149_v8 = vld [vmem:[#allocation5 + $0xe8] sm:$0xff]  ;;  %s237_s27 = sshll.u32 %s433_s26, 4  ;;  %s238_s27 = int_to_ptr.vmem [resolvable:$true] %s237_s27 }
  0x1d   :  { %285 = vmatpush3.msra.mxu0 %v57_v1  ;;  %320 = vmatpush3.msra.mxu1 %v151_v5  ;;  %v52_v9 = vld [vmem:[#allocation5 + $0x50] sm:$0xff]  ;;  %v148_v10 = vld [vmem:[#allocation5 + $0xe0] sm:$0xff]  ;;  %v51_v11 = vld [vmem:[#allocation5 + $0x48] sm:$0xff]  ;;  %s401_s28 = scalar_lea.vmem %s238_s27, 128  ;;  %p406_p11 = scmp.lt.s32.totalorder %s238_s27, %s238_s27 }
  0x1e   :  { %286 = vmatprep.subr.mxu0 %v431_v0  ;;  %321 = vmatprep.subr.mxu1 %v431_v0  ;;  %v147_v12 = vld [vmem:[#allocation5 + $0xd8] sm:$0xff]  ;;  %v50_v13 = vld [vmem:[#allocation5 + $0x40] sm:$0xff]  ;;  %v146_v14 = vld [vmem:[#allocation5 + $0xd0] sm:$0xff]  ;;  %p402_p10 = scmp.ne.s32.totalorder %s238_s27, %s401_s28  ;;  %p407_p12 = scmp.lt.s32.totalorder %s401_s28, %s401_s28 }
  0x1f   :  { %287 = vmatpush3.msra.mxu0 %v56_v2  ;;  %322 = vmatpush3.msra.mxu1 %v150_v7  ;;  %v49_v15 = vld [vmem:[#allocation5 + $0x38] sm:$0xff]  ;;  %v145_v16 = vld [vmem:[#allocation5 + $0xc8] sm:$0xff]  ;;  %v48_v17 = vld [vmem:[#allocation5 + $0x30] sm:$0xff] }
  0x20   :  { %288 = vmatprep.subr.mxu0 %v431_v0  ;;  %323 = vmatprep.subr.mxu1 %v431_v0  ;;  %v144_v18 = vld [vmem:[#allocation5 + $0xc0] sm:$0xff]  ;;  %v47_v19 = vld [vmem:[#allocation5 + $0x28] sm:$0xff]  ;;  %v143_v20 = vld [vmem:[#allocation5 + $0xb8] sm:$0xff]  ;;  %p408_p13 = por %p407_p12, %p406_p11 }
  0x21   :  { %289 = vmatpush3.msra.mxu0 %v55_v3  ;;  %324 = vmatpush3.msra.mxu1 %v149_v8  ;;  %v46_v21 = vld [vmem:[#allocation5 + $0x20] sm:$0xff]  ;;  %v142_v22 = vld [vmem:[#allocation5 + $0xb0] sm:$0xff]  ;;  %v45_v23 = vld [vmem:[#allocation5 + $0x18] sm:$0xff] }
  0x22   :  { %290 = vmatprep.subr.mxu0 %v431_v0  ;;  %325 = vmatprep.subr.mxu1 %v431_v0  ;;  %v141_v24 = vld [vmem:[#allocation5 + $0xa8] sm:$0xff]  ;;  %v44_v25 = vld [vmem:[#allocation5 + $0x10] sm:$0xff]  ;;  %v140_v26 = vld [vmem:[#allocation5 + $0xa0] sm:$0xff]  ;;  %p409_p0 = pnand %p408_p13, %p402_p10 }
  0x23   :  { %291 = vmatpush3.msra.mxu0 %v54_v4  ;;  %326 = vmatpush3.msra.mxu1 %v148_v10  ;;  %v43_v27 = vld [vmem:[#allocation5 + $0x8] sm:$0xff]  ;;  %v139_v28 = vld [vmem:[#allocation5 + $0x98] sm:$0xff]  ;;  %v42_v29 = vld [vmem:[#allocation5] sm:$0xff] }
  0x24   :  { %292 = vmatprep.subr.mxu0 %v431_v0  ;;  %327 = vmatprep.subr.mxu1 %v431_v0  ;;  %v41_v30 = vld [vmem:[#allocation2] sm:$0xff]  ;;  %v138_v31 = vld [vmem:[#allocation5 + $0x90] sm:$0xff]  ;;  %v137_v32 = vld [vmem:[#allocation5 + $0x88] sm:$0xff] }
  0x25   :  { %293 = vmatpush3.msra.mxu0 %v53_v6  ;;  %328 = vmatpush3.msra.mxu1 %v147_v12  ;;  %v136_v33 = vld [vmem:[#allocation5 + $0x80] sm:$0xff]  ;;  %v247_v34 = vld [vmem:[%s505_s2] ss:$0 sm:$0xff]  ;;  %v249_v38 = vld [vmem:[%s505_s2 + $0x1] ss:$0 sm:$0xff] }
  0x26   :  { %294 = vmatprep.subr.mxu0 %v431_v0  ;;  %329 = vmatprep.subr.mxu1 %v431_v0 }
  0x27   :  { %295 = vmatpush3.msra.mxu0 %v52_v9  ;;  %330 = vmatpush3.msra.mxu1 %v146_v14 }
  0x28   :  { %296 = vmatprep.subr.mxu0 %v431_v0  ;;  %331 = vmatprep.subr.mxu1 %v431_v0 }
  0x29   :  { %297 = vmatpush3.msra.mxu0 %v51_v11  ;;  %332 = vmatpush3.msra.mxu1 %v145_v16 }
  0x2a   :  { %298 = vmatprep.subr.mxu0 %v431_v0  ;;  %333 = vmatprep.subr.mxu1 %v431_v0 }
  0x2b   :  { %299 = vmatpush3.msra.mxu0 %v50_v13  ;;  %334 = vmatpush3.msra.mxu1 %v144_v18 }
  0x2c   :  { %300 = vmatprep.subr.mxu0 %v431_v0  ;;  %335 = vmatprep.subr.mxu1 %v431_v0 }
  0x2d   :  { %301 = vmatpush3.msra.mxu0 %v49_v15  ;;  %336 = vmatpush3.msra.mxu1 %v143_v20 }
  0x2e   :  { %302 = vmatprep.subr.mxu0 %v431_v0  ;;  %337 = vmatprep.subr.mxu1 %v431_v0 }
  0x2f   :  { %303 = vmatpush3.msra.mxu0 %v48_v17  ;;  %338 = vmatpush3.msra.mxu1 %v142_v22 }
  0x30   :  { %304 = vmatprep.subr.mxu0 %v431_v0  ;;  %339 = vmatprep.subr.mxu1 %v431_v0 }
  0x31   :  { %305 = vmatpush3.msra.mxu0 %v47_v19  ;;  %340 = vmatpush3.msra.mxu1 %v141_v24 }
  0x32   :  { %306 = vmatprep.subr.mxu0 %v431_v0  ;;  %341 = vmatprep.subr.mxu1 %v431_v0 }
  0x33   :  { %307 = vmatpush3.msra.mxu0 %v46_v21  ;;  %342 = vmatpush3.msra.mxu1 %v140_v26 }
  0x34   :  { %308 = vmatprep.subr.mxu0 %v431_v0  ;;  %343 = vmatprep.subr.mxu1 %v431_v0 }
  0x35   :  { %309 = vmatpush3.msra.mxu0 %v45_v23  ;;  %344 = vmatpush3.msra.mxu1 %v139_v28 }
  0x36   :  { %310 = vmatprep.subr.mxu0 %v431_v0  ;;  %345 = vmatprep.subr.mxu1 %v431_v0 }
  0x37   :  { %311 = vmatpush3.msra.mxu0 %v44_v25  ;;  %346 = vmatpush3.msra.mxu1 %v138_v31 }
  0x38   :  { %312 = vmatprep.subr.mxu0 %v431_v0  ;;  %347 = vmatprep.subr.mxu1 %v431_v0 }
  0x39   :  { %313 = vmatpush3.msra.mxu0 %v43_v27  ;;  %348 = vmatpush3.msra.mxu1 %v137_v32 }
  0x3a   :  { %314 = vmatprep.subr.mxu0 %v431_v0  ;;  %349 = vmatprep.subr.mxu1 %v431_v0 }
  0x3b   :  { %315 = vmatpush3.msra.mxu0 %v42_v29  ;;  %350 = vmatpush3.msra.mxu1 %v136_v33 }
  0x3c   :  { %317 = vmatmul.mubr.f32.vlgmr.msra.gmra.mxu0 %v41_v30 }
  0xfc   :  { %v131_v35 = vpop.f32.mrf.mxu0 }
  0xfd   :  { %v132_v36 = vadd.f32 %v247_v34, %v131_v35 }
  0xfe   :  { %v318_v37 = vpop.f32.mrf.mxu0 }
  0xff   :  { %352 = vmatmul.mubr.f32.vlgmr.msra.gmra.mxu1 %v132_v36 }
 0x1bf   :  { %v226_v39 = vpop.f32.mrf.mxu1 }
 0x1c0   :  { %v227_v40 = vadd.f32 %v249_v38, %v226_v39 }
 0x1c1   :  { %v353_v41 = vpop.f32.mrf.mxu1 }
 0x1c2   :  { %230 = vst [vmem:[#allocation7] sm:$0xff] %v227_v40 }
 0x1c3   :  { %412 = shalt.err (!%p409_p0)
}
 0x1c4   :  { %240 = dma.vmem_to_hbm [thread:$0]  %s238_s27, 128, %s506_s3, [#allocation4]  }
 0x1c5   :  { %425 = dma.done.wait [#allocation4], 128  }
 0x1c6   :  { %426 = vsyncadd [#allocation4], 4294967168 }
 0x1c7   :  { %244 = vsyncpa [#allocation3], 1 }
 0x1c8   :  { %245 = vsyncpa [#allocation6], 1 }
 0x1c9   :  { %246 = vsyncpa [#allocation4], 1 }

// kernel: tpu_custom_call.1
= control target key start
LH: loop header
LB: loop body
LE: loop exit
PB: predicated region body
PF: predicated region fallthrough
CT: control target
= control target key end

     0   :  { %8 = vsyncpa [#allocation3], 0  ;;  %s503_s0 = inlined_call_operand.hbm [shape: f32[8,128], index: 0, kind: input, shape index: {}]   ;;  %s504_s1 = inlined_call_operand.hbm [shape: f32[2,128,128], index: 1, kind: input, shape index: {}]   ;;  %s505_s2 = inlined_call_operand.vmem [shape: f32[2,1,128], index: 2, kind: input, shape index: {}]   ;;  %s506_s3 = inlined_call_operand.hbm [shape: f32[8,128], index: 3, kind: output, shape index: {}]  }
   0x1   :  { %9 = vsyncpa [#allocation6], 0 }
   0x2   :  { %10 = vsyncpa [#allocation4], 0  ;;  %s427_s12 = smov [#allocation2]   ;;  %s428_s14 = smov [#allocation5]  }
   0x3   :  { %s17_s13 = sshll.u32 %s427_s12, 4  ;;  %s26_s15 = sshll.u32 %s428_s14, 4  ;;  %s18_s13 = int_to_ptr.vmem [resolvable:$true] %s17_s13  ;;  %s27_s15 = int_to_ptr.vmem [resolvable:$true] %s26_s15 }
   0x4   :  { %s369_s16 = scalar_lea.vmem %s18_s13, 128  ;;  %p374_p1 = scmp.lt.s32.totalorder %s18_s13, %s18_s13 }
   0x5   :  { %p370_p0 = scmp.ne.s32.totalorder %s18_s13, %s369_s16  ;;  %p375_p2 = scmp.lt.s32.totalorder %s369_s16, %s369_s16 }
   0x7   :  { %p376_p3 = por %p375_p2, %p374_p1 }
   0x9   :  { %p377_p4 = pnand %p376_p3, %p370_p0 }
   0xb   :  { %380 = shalt.err (!%p377_p4)
}
   0xc   :  { %20 = dma.hbm_to_vmem [thread:$0]  %s503_s0, 128, %s18_s13, [#allocation3]  }
   0xd   :  { %s389_s19 = scalar_lea.vmem %s27_s15, 4096  ;;  %p394_p6 = scmp.lt.s32.totalorder %s27_s15, %s27_s15 }
   0xe   :  { %p390_p5 = scmp.ne.s32.totalorder %s27_s15, %s389_s19  ;;  %p395_p7 = scmp.lt.s32.totalorder %s389_s19, %s389_s19 }
  0x10   :  { %p396_p8 = por %p395_p7, %p394_p6 }
  0x12   :  { %p397_p9 = pnand %p396_p8, %p390_p5 }
  0x14   :  { %400 = shalt.err (!%p397_p9)
}
  0x15   :  { %s429_s20 = smov 128   ;;  %s430_s21 = smov 8  }
  0x16   :  { %32 = dma.hbm_to_vmem [thread:$0]  %s504_s1, 4096, %s27_s15, [#allocation6], %s429_s20, %s429_s20, %s430_s21  }
  0x17   :  { %421 = dma.done.wait [#allocation3], 128  }
  0x18   :  { %422 = vsyncadd [#allocation3], 4294967168 }
  0x19   :  { %423 = dma.done.wait [#allocation6], 4096  }
  0x1a   :  { %424 = vsyncadd [#allocation6], 4294963200  ;;  %v431_v0 = vmov 0.0   ;;  %vm432_vm0 = vmmov 0   ;;  %v57_v1 = vld [vmem:[#allocation5 + $0x78] sm:$0xff]  ;;  %v56_v2 = vld [vmem:[#allocation5 + $0x70] sm:$0xff] }
  0x1b   :  { %284 = vmatprep.subr.mxu0 %v431_v0  ;;  %316 = vmatprep.mubr.msk.f32.mxu0 %vm432_vm0, %v431_v0  ;;  %v55_v3 = vld [vmem:[#allocation5 + $0x68] sm:$0xff]  ;;  %v54_v4 = vld [vmem:[#allocation5 + $0x60] sm:$0xff]  ;;  %v151_v5 = vld [vmem:[#allocation5 + $0xf8] sm:$0xff]  ;;  %s433_s26 = smov [#allocation7]  }
  0x1c   :  { %319 = vmatprep.subr.mxu1 %v431_v0  ;;  %351 = vmatprep.mubr.msk.f32.mxu1 %vm432_vm0, %v431_v0  ;;  %v53_v6 = vld [vmem:[#allocation5 + $0x58] sm:$0xff]  ;;  %v150_v7 = vld [vmem:[#allocation5 + $0xf0] sm:$0xff]  ;;  %v149_v8 = vld [vmem:[#allocation5 + $0xe8] sm:$0xff]  ;;  %s237_s27 = sshll.u32 %s433_s26, 4  ;;  %s238_s27 = int_to_ptr.vmem [resolvable:$true] %s237_s27 }
  0x1d   :  { %285 = vmatpush3.msra.mxu0 %v57_v1  ;;  %320 = vmatpush3.msra.mxu1 %v151_v5  ;;  %v52_v9 = vld [vmem:[#allocation5 + $0x50] sm:$0xff]  ;;  %v148_v10 = vld [vmem:[#allocation5 + $0xe0] sm:$0xff]  ;;  %v51_v11 = vld [vmem:[#allocation5 + $0x48] sm:$0xff]  ;;  %s401_s28 = scalar_lea.vmem %s238_s27, 128  ;;  %p406_p11 = scmp.lt.s32.totalorder %s238_s27, %s238_s27 }
  0x1e   :  { %286 = vmatprep.subr.mxu0 %v431_v0  ;;  %321 = vmatprep.subr.mxu1 %v431_v0  ;;  %v147_v12 = vld [vmem:[#allocation5 + $0xd8] sm:$0xff]  ;;  %v50_v13 = vld [vmem:[#allocation5 + $0x40] sm:$0xff]  ;;  %v146_v14 = vld [vmem:[#allocation5 + $0xd0] sm:$0xff]  ;;  %p402_p10 = scmp.ne.s32.totalorder %s238_s27, %s401_s28  ;;  %p407_p12 = scmp.lt.s32.totalorder %s401_s28, %s401_s28 }
  0x1f   :  { %287 = vmatpush3.msra.mxu0 %v56_v2  ;;  %322 = vmatpush3.msra.mxu1 %v150_v7  ;;  %v49_v15 = vld [vmem:[#allocation5 + $0x38] sm:$0xff]  ;;  %v145_v16 = vld [vmem:[#allocation5 + $0xc8] sm:$0xff]  ;;  %v48_v17 = vld [vmem:[#allocation5 + $0x30] sm:$0xff] }
  0x20   :  { %288 = vmatprep.subr.mxu0 %v431_v0  ;;  %323 = vmatprep.subr.mxu1 %v431_v0  ;;  %v144_v18 = vld [vmem:[#allocation5 + $0xc0] sm:$0xff]  ;;  %v47_v19 = vld [vmem:[#allocation5 + $0x28] sm:$0xff]  ;;  %v143_v20 = vld [vmem:[#allocation5 + $0xb8] sm:$0xff]  ;;  %p408_p13 = por %p407_p12, %p406_p11 }
  0x21   :  { %289 = vmatpush3.msra.mxu0 %v55_v3  ;;  %324 = vmatpush3.msra.mxu1 %v149_v8  ;;  %v46_v21 = vld [vmem:[#allocation5 + $0x20] sm:$0xff]  ;;  %v142_v22 = vld [vmem:[#allocation5 + $0xb0] sm:$0xff]  ;;  %v45_v23 = vld [vmem:[#allocation5 + $0x18] sm:$0xff] }
  0x22   :  { %290 = vmatprep.subr.mxu0 %v431_v0  ;;  %325 = vmatprep.subr.mxu1 %v431_v0  ;;  %v141_v24 = vld [vmem:[#allocation5 + $0xa8] sm:$0xff]  ;;  %v44_v25 = vld [vmem:[#allocation5 + $0x10] sm:$0xff]  ;;  %v140_v26 = vld [vmem:[#allocation5 + $0xa0] sm:$0xff]  ;;  %p409_p0 = pnand %p408_p13, %p402_p10 }
  0x23   :  { %291 = vmatpush3.msra.mxu0 %v54_v4  ;;  %326 = vmatpush3.msra.mxu1 %v148_v10  ;;  %v43_v27 = vld [vmem:[#allocation5 + $0x8] sm:$0xff]  ;;  %v139_v28 = vld [vmem:[#allocation5 + $0x98] sm:$0xff]  ;;  %v42_v29 = vld [vmem:[#allocation5] sm:$0xff] }
  0x24   :  { %292 = vmatprep.subr.mxu0 %v431_v0  ;;  %327 = vmatprep.subr.mxu1 %v431_v0  ;;  %v41_v30 = vld [vmem:[#allocation2] sm:$0xff]  ;;  %v138_v31 = vld [vmem:[#allocation5 + $0x90] sm:$0xff]  ;;  %v137_v32 = vld [vmem:[#allocation5 + $0x88] sm:$0xff] }
  0x25   :  { %293 = vmatpush3.msra.mxu0 %v53_v6  ;;  %328 = vmatpush3.msra.mxu1 %v147_v12  ;;  %v136_v33 = vld [vmem:[#allocation5 + $0x80] sm:$0xff]  ;;  %v247_v34 = vld [vmem:[%s505_s2] ss:$0 sm:$0xff]  ;;  %v249_v38 = vld [vmem:[%s505_s2 + $0x1] ss:$0 sm:$0xff] }
  0x26   :  { %294 = vmatprep.subr.mxu0 %v431_v0  ;;  %329 = vmatprep.subr.mxu1 %v431_v0 }
  0x27   :  { %295 = vmatpush3.msra.mxu0 %v52_v9  ;;  %330 = vmatpush3.msra.mxu1 %v146_v14 }
  0x28   :  { %296 = vmatprep.subr.mxu0 %v431_v0  ;;  %331 = vmatprep.subr.mxu1 %v431_v0 }
  0x29   :  { %297 = vmatpush3.msra.mxu0 %v51_v11  ;;  %332 = vmatpush3.msra.mxu1 %v145_v16 }
  0x2a   :  { %298 = vmatprep.subr.mxu0 %v431_v0  ;;  %333 = vmatprep.subr.mxu1 %v431_v0 }
  0x2b   :  { %299 = vmatpush3.msra.mxu0 %v50_v13  ;;  %334 = vmatpush3.msra.mxu1 %v144_v18 }
  0x2c   :  { %300 = vmatprep.subr.mxu0 %v431_v0  ;;  %335 = vmatprep.subr.mxu1 %v431_v0 }
  0x2d   :  { %301 = vmatpush3.msra.mxu0 %v49_v15  ;;  %336 = vmatpush3.msra.mxu1 %v143_v20 }
  0x2e   :  { %302 = vmatprep.subr.mxu0 %v431_v0  ;;  %337 = vmatprep.subr.mxu1 %v431_v0 }
  0x2f   :  { %303 = vmatpush3.msra.mxu0 %v48_v17  ;;  %338 = vmatpush3.msra.mxu1 %v142_v22 }
  0x30   :  { %304 = vmatprep.subr.mxu0 %v431_v0  ;;  %339 = vmatprep.subr.mxu1 %v431_v0 }
  0x31   :  { %305 = vmatpush3.msra.mxu0 %v47_v19  ;;  %340 = vmatpush3.msra.mxu1 %v141_v24 }
  0x32   :  { %306 = vmatprep.subr.mxu0 %v431_v0  ;;  %341 = vmatprep.subr.mxu1 %v431_v0 }
  0x33   :  { %307 = vmatpush3.msra.mxu0 %v46_v21  ;;  %342 = vmatpush3.msra.mxu1 %v140_v26 }
  0x34   :  { %308 = vmatprep.subr.mxu0 %v431_v0  ;;  %343 = vmatprep.subr.mxu1 %v431_v0 }
  0x35   :  { %309 = vmatpush3.msra.mxu0 %v45_v23  ;;  %344 = vmatpush3.msra.mxu1 %v139_v28 }
  0x36   :  { %310 = vmatprep.subr.mxu0 %v431_v0  ;;  %345 = vmatprep.subr.mxu1 %v431_v0 }
  0x37   :  { %311 = vmatpush3.msra.mxu0 %v44_v25  ;;  %346 = vmatpush3.msra.mxu1 %v138_v31 }
  0x38   :  { %312 = vmatprep.subr.mxu0 %v431_v0  ;;  %347 = vmatprep.subr.mxu1 %v431_v0 }
  0x39   :  { %313 = vmatpush3.msra.mxu0 %v43_v27  ;;  %348 = vmatpush3.msra.mxu1 %v137_v32 }
  0x3a   :  { %314 = vmatprep.subr.mxu0 %v431_v0  ;;  %349 = vmatprep.subr.mxu1 %v431_v0 }
  0x3b   :  { %315 = vmatpush3.msra.mxu0 %v42_v29  ;;  %350 = vmatpush3.msra.mxu1 %v136_v33 }
  0x3c   :  { %317 = vmatmul.mubr.f32.vlgmr.msra.gmra.mxu0 %v41_v30 }
  0xfc   :  { %v131_v35 = vpop.f32.mrf.mxu0 }
  0xfd   :  { %v132_v36 = vadd.f32 %v247_v34, %v131_v35 }
  0xfe   :  { %v318_v37 = vpop.f32.mrf.mxu0 }
  0xff   :  { %352 = vmatmul.mubr.f32.vlgmr.msra.gmra.mxu1 %v132_v36 }
 0x1bf   :  { %v226_v39 = vpop.f32.mrf.mxu1 }
 0x1c0   :  { %v227_v40 = vadd.f32 %v249_v38, %v226_v39 }
 0x1c1   :  { %v353_v41 = vpop.f32.mrf.mxu1 }
 0x1c2   :  { %230 = vst [vmem:[#allocation7] sm:$0xff] %v227_v40 }
 0x1c3   :  { %412 = shalt.err (!%p409_p0)
}
 0x1c4   :  { %240 = dma.vmem_to_hbm [thread:$0]  %s238_s27, 128, %s506_s3, [#allocation4]  }
 0x1c5   :  { %425 = dma.done.wait [#allocation4], 128  }
 0x1c6   :  { %426 = vsyncadd [#allocation4], 4294967168 }
 0x1c7   :  { %244 = vsyncpa [#allocation3], 1 }
 0x1c8   :  { %245 = vsyncpa [#allocation6], 1 }
 0x1c9   :  { %246 = vsyncpa [#allocation4], 1 }

</bundles_post_ra>
